<compile_context>
chip_gen: v7x
topology: tpu7x:2x2x1
jax: 0.10.0
libtpu: 0.0.40
codegen_flags: <defaults>
</compile_context>

<pallas_src>
import math

import jax
import jax.numpy as jnp
from jax.experimental import pallas as pl
from jax.experimental.pallas import tpu as pltpu

_LANE = 128      # lane width: last-dim padding target
_SUBLANE = 8     # sublane width: batch-tile alignment


def _round_up(x, m):
    return ((x + m - 1) // m) * m


def _gelu_exact(x):
    # PyTorch nn.GELU() default is the exact erf-based formulation (f32 VPU).
    return 0.5 * x * (1.0 + jax.lax.erf(x * (1.0 / math.sqrt(2.0))))


def mlp_kernel(x_ref, w1_ref, b1_ref, w2_ref, b2_ref, w3_ref, b3_ref, o_ref):
    x = x_ref[...]                                   # bf16 batch tile

    # Layer 1: Linear(D -> 2D) + GELU   (Dropout p=0.05 -> identity in eval)
    h1 = jnp.dot(x, w1_ref[...], preferred_element_type=jnp.float32) + b1_ref[...]
    h1 = _gelu_exact(h1)

    # Layer 2: Linear(2D -> D//2) + GELU (Dropout p=0.01 -> identity in eval)
    h2 = (
        jnp.dot(h1.astype(jnp.bfloat16), w2_ref[...],
                preferred_element_type=jnp.float32)
        + b2_ref[...]
    )
    h2 = _gelu_exact(h2)

    # Layer 3: Linear(D//2 -> output_dim), lane-dense padded output store.
    o_ref[...] = (
        jnp.dot(h2.astype(jnp.bfloat16), w3_ref[...],
                preferred_element_type=jnp.float32)
        + b3_ref[...]
    ).astype(o_ref.dtype)


def _vmem_capacity_bytes():
    try:
        return int(pltpu.get_tpu_info().vmem_capacity_bytes)
    except Exception:
        return 64 * 1024 * 1024   # conservative fallback (v7x per-TC physical)


def _choose_tm(batch, d_pad, h1_pad, h2_pad, out_pad, weight_bytes):
    """Pick the batch tile so resident weights + double-buffered x/out tiles +
    live f32 intermediates stay well inside this generation's VMEM."""
    cap = _vmem_capacity_bytes()
    budget = int(min(0.45 * cap, 48 * 1024 * 1024))
    # per-row bytes: 2x-buffered bf16 x tile + 2x-buffered f32 out tile +
    # f32 h1/h2/out live values inside the kernel body.
    per_row = 2 * 2 * d_pad + 2 * 4 * out_pad + 4 * (h1_pad + h2_pad + out_pad)
    avail = max(budget - weight_bytes, per_row * _SUBLANE)
    tm = max(_SUBLANE, (avail // per_row) // _SUBLANE * _SUBLANE)
    tm = min(tm, 512)                           # diminishing returns past this
    tm = min(tm, _round_up(batch, _SUBLANE))    # don't over-pad tiny batches
    return int(tm)


def pad_mlp_params(params):
    """Zero-pad every layer width up to a multiple of 128 (lane-dense) and
    cast weights to bf16 for the MXU.  Padded rows/cols are zero so the valid
    output slice is unchanged.  Biases stay f32 (VPU add)."""
    padded = {}
    for i in (1, 2, 3):
        w = params[f"w{i}"]
        b = params[f"b{i}"].reshape(1, -1)
        fi, fo = w.shape
        fi_p, fo_p = _round_up(fi, _LANE), _round_up(fo, _LANE)
        wp = jnp.zeros((fi_p, fo_p), jnp.float32).at[:fi, :fo].set(w)
        bp = jnp.zeros((1, fo_p), jnp.float32).at[:, :fo].set(b)
        padded[f"w{i}"] = wp.astype(jnp.bfloat16)
        padded[f"b{i}"] = bp
    return padded


def mlp_forward(x, padded_params, output_dim):
    """x: (B, D) float32. padded_params: output of pad_mlp_params."""
    w1, b1 = padded_params["w1"], padded_params["b1"]
    w2, b2 = padded_params["w2"], padded_params["b2"]
    w3, b3 = padded_params["w3"], padded_params["b3"]

    B, D = x.shape
    d_pad, h1_pad = w1.shape
    h2_pad = w2.shape[1]
    out_pad = w3.shape[1]

    weight_bytes = 2 * (w1.size + w2.size + w3.size) + 4 * (b1.size + b2.size + b3.size)
    tm = _choose_tm(B, d_pad, h1_pad, h2_pad, out_pad, weight_bytes)
    b_pad = _round_up(max(B, tm), tm)

    # Zero-pad the input to (b_pad, d_pad) and cast to bf16 (halves x DMA).
    x_p = jnp.zeros((b_pad, d_pad), jnp.bfloat16).at[:B, :D].set(
        x.astype(jnp.bfloat16)
    )

    cap = _vmem_capacity_bytes()
    needed = (
        weight_bytes
        + tm * (2 * 2 * d_pad + 2 * 4 * out_pad + 4 * (h1_pad + h2_pad + out_pad))
        + (2 << 20)
    )
    vmem_limit = int(min(0.9 * cap, max(32 << 20, 2 * needed)))

    const = lambda i: (0, 0)   # weights/biases: same block for every grid step
    out_padded = pl.pallas_call(
        mlp_kernel,
        out_shape=jax.ShapeDtypeStruct((b_pad, out_pad), jnp.float32),
        grid=(b_pad // tm,),
        in_specs=[
            pl.BlockSpec((tm, d_pad), lambda i: (i, 0)),   # x tile
            pl.BlockSpec((d_pad, h1_pad), const),          # w1 (resident)
            pl.BlockSpec((1, h1_pad), const),              # b1
            pl.BlockSpec((h1_pad, h2_pad), const),         # w2
            pl.BlockSpec((1, h2_pad), const),              # b2
            pl.BlockSpec((h2_pad, out_pad), const),        # w3
            pl.BlockSpec((1, out_pad), const),             # b3
        ],
        out_specs=pl.BlockSpec((tm, out_pad), lambda i: (i, 0)),
        compiler_params=pltpu.CompilerParams(
            dimension_semantics=("parallel",),   # megacore sharding on v7x
            vmem_limit_bytes=vmem_limit,
        ),
    )(x_p, w1, b1, w2, b2, w3, b3)

    return out_padded[:B, :output_dim]


def init_mlp_params(key, input_dim, output_dim):
    """Matches the PyTorch module: xavier_uniform_ weights, biases = 0.01.
    Weights stored transposed (in, out) so the kernel computes x @ W + b."""
    dims = [
        (input_dim, input_dim * 2),
        (input_dim * 2, input_dim // 2),
        (input_dim // 2, output_dim),
    ]
    params = {}
    for i, (fan_in, fan_out) in enumerate(dims, start=1):
        key, sub = jax.random.split(key)
        bound = math.sqrt(6.0 / (fan_in + fan_out))
        params[f"w{i}"] = jax.random.uniform(
            sub, (fan_in, fan_out), jnp.float32, minval=-bound, maxval=bound
        )
        params[f"b{i}"] = jnp.full((1, fan_out), 0.01, jnp.float32)
    return params


if __name__ == "__main__":
    INPUT_DIM = 32
    OUTPUT_DIM = 10
    BATCH = 8

    key = jax.random.PRNGKey(0)
    k_params, k_x = jax.random.split(key)

    params = init_mlp_params(k_params, INPUT_DIM, OUTPUT_DIM)
    padded_params = pad_mlp_params(params)
    x = jax.random.normal(k_x, (BATCH, INPUT_DIM), jnp.float32)

    out = mlp_forward(x, padded_params, OUTPUT_DIM)
    jax.block_until_ready(out)
    assert out.shape == (BATCH, OUTPUT_DIM)

    # Reference 1: pure-JAX with the same bf16-operand / f32-accumulate recipe
    # the kernel uses (tight tolerance).
    def ref_bf16(x, p):
        h = x.astype(jnp.bfloat16)
        h = _gelu_exact(
            jnp.dot(h, p["w1"].astype(jnp.bfloat16),
                    preferred_element_type=jnp.float32) + p["b1"]
        )
        h = _gelu_exact(
            jnp.dot(h.astype(jnp.bfloat16), p["w2"].astype(jnp.bfloat16),
                    preferred_element_type=jnp.float32) + p["b2"]
        )
        return (
            jnp.dot(h.astype(jnp.bfloat16), p["w3"].astype(jnp.bfloat16),
                    preferred_element_type=jnp.float32) + p["b3"]
        )

    # Reference 2: full-f32 PyTorch-equivalent math (loose tolerance covers
    # the bf16 operand rounding).
    def ref_f32(x, p):
        h = _gelu_exact(x @ p["w1"] + p["b1"])
        h = _gelu_exact(h @ p["w2"] + p["b2"])
        return h @ p["w3"] + p["b3"]

    assert jnp.allclose(out, ref_bf16(x, params), atol=1e-3, rtol=1e-3)
    assert jnp.allclose(out, ref_f32(x, params), atol=5e-2, rtol=5e-2)

    print("KERNEL_OK")
</pallas_src>

<mosaic_0001>
module attributes {stable_mosaic.version = 11 : i64} {
  func.func @mlp_kernel(%arg0: i32, %arg1: memref<8x128xbf16, #tpu.memory_space<vmem>>, %arg2: memref<128x128xbf16, #tpu.memory_space<vmem>>, %arg3: memref<1x128xf32, #tpu.memory_space<vmem>>, %arg4: memref<128x128xbf16, #tpu.memory_space<vmem>>, %arg5: memref<1x128xf32, #tpu.memory_space<vmem>>, %arg6: memref<128x128xbf16, #tpu.memory_space<vmem>>, %arg7: memref<1x128xf32, #tpu.memory_space<vmem>>, %arg8: memref<8x128xf32, #tpu.memory_space<vmem>>) attributes {dimension_semantics = [#tpu.dimension_semantics<parallel>], iteration_bounds = array<i64: 1>, scalar_prefetch = 0 : i64, scratch_operands = 0 : i64, tpu.core_type = #tpu.core_type<tc>, window_params = [{transform_indices = @transform_0, window_bounds = array<i64: 8, 128>}, {pipeline_mode = #tpu.pipeline_mode<synchronous>, transform_indices = @transform_1, window_bounds = array<i64: 128, 128>}, {pipeline_mode = #tpu.pipeline_mode<synchronous>, transform_indices = @transform_2, window_bounds = array<i64: 1, 128>}, {pipeline_mode = #tpu.pipeline_mode<synchronous>, transform_indices = @transform_3, window_bounds = array<i64: 128, 128>}, {pipeline_mode = #tpu.pipeline_mode<synchronous>, transform_indices = @transform_4, window_bounds = array<i64: 1, 128>}, {pipeline_mode = #tpu.pipeline_mode<synchronous>, transform_indices = @transform_5, window_bounds = array<i64: 128, 128>}, {pipeline_mode = #tpu.pipeline_mode<synchronous>, transform_indices = @transform_6, window_bounds = array<i64: 1, 128>}, {transform_indices = @transform_7, window_bounds = array<i64: 8, 128>}]} {
    %c0 = arith.constant 0 : index
    %c0_0 = arith.constant 0 : index
    %0 = vector.load %arg1[%c0, %c0_0] : memref<8x128xbf16, #tpu.memory_space<vmem>>, vector<8x128xbf16>
    %c0_1 = arith.constant 0 : index
    %c0_2 = arith.constant 0 : index
    %1 = vector.load %arg2[%c0_1, %c0_2] : memref<128x128xbf16, #tpu.memory_space<vmem>>, vector<128x128xbf16>
    %cst = arith.constant dense<0.000000e+00> : vector<8x128xf32>
    %2 = tpu.matmul %0, %1, %cst {dimension_numbers = #tpu.dot_dimension_numbers<[1], [0], [0], [1], [0, 0, 1, 1], [], []>} : vector<8x128xbf16>, vector<128x128xbf16>, vector<8x128xf32> -> vector<8x128xf32>
    %c0_3 = arith.constant 0 : index
    %c0_4 = arith.constant 0 : index
    %3 = vector.load %arg3[%c0_3, %c0_4] : memref<1x128xf32, #tpu.memory_space<vmem>>, vector<1x128xf32>
    %4 = vector.broadcast %3 : vector<1x128xf32> to vector<8x128xf32>
    %5 = arith.addf %2, %4 : vector<8x128xf32>
    %cst_5 = arith.constant 5.000000e-01 : f32
    %6 = vector.broadcast %cst_5 : f32 to vector<8x128xf32>
    %7 = arith.mulf %6, %5 : vector<8x128xf32>
    %cst_6 = arith.constant 0.707106769 : f32
    %8 = vector.broadcast %cst_6 : f32 to vector<8x128xf32>
    %9 = arith.mulf %5, %8 : vector<8x128xf32>
    %10 = math.erf %9 : vector<8x128xf32>
    %cst_7 = arith.constant 1.000000e+00 : f32
    %11 = vector.broadcast %cst_7 : f32 to vector<8x128xf32>
    %12 = arith.addf %11, %10 : vector<8x128xf32>
    %13 = arith.mulf %7, %12 : vector<8x128xf32>
    %14 = arith.truncf %13 : vector<8x128xf32> to vector<8x128xbf16>
    %c0_8 = arith.constant 0 : index
    %c0_9 = arith.constant 0 : index
    %15 = vector.load %arg4[%c0_8, %c0_9] : memref<128x128xbf16, #tpu.memory_space<vmem>>, vector<128x128xbf16>
    %cst_10 = arith.constant dense<0.000000e+00> : vector<8x128xf32>
    %16 = tpu.matmul %14, %15, %cst_10 {dimension_numbers = #tpu.dot_dimension_numbers<[1], [0], [0], [1], [0, 0, 1, 1], [], []>} : vector<8x128xbf16>, vector<128x128xbf16>, vector<8x128xf32> -> vector<8x128xf32>
    %c0_11 = arith.constant 0 : index
    %c0_12 = arith.constant 0 : index
    %17 = vector.load %arg5[%c0_11, %c0_12] : memref<1x128xf32, #tpu.memory_space<vmem>>, vector<1x128xf32>
    %18 = vector.broadcast %17 : vector<1x128xf32> to vector<8x128xf32>
    %19 = arith.addf %16, %18 : vector<8x128xf32>
    %cst_13 = arith.constant 5.000000e-01 : f32
    %20 = vector.broadcast %cst_13 : f32 to vector<8x128xf32>
    %21 = arith.mulf %20, %19 : vector<8x128xf32>
    %cst_14 = arith.constant 0.707106769 : f32
    %22 = vector.broadcast %cst_14 : f32 to vector<8x128xf32>
    %23 = arith.mulf %19, %22 : vector<8x128xf32>
    %24 = math.erf %23 : vector<8x128xf32>
    %cst_15 = arith.constant 1.000000e+00 : f32
    %25 = vector.broadcast %cst_15 : f32 to vector<8x128xf32>
    %26 = arith.addf %25, %24 : vector<8x128xf32>
    %27 = arith.mulf %21, %26 : vector<8x128xf32>
    %28 = arith.truncf %27 : vector<8x128xf32> to vector<8x128xbf16>
    %c0_16 = arith.constant 0 : index
    %c0_17 = arith.constant 0 : index
    %29 = vector.load %arg6[%c0_16, %c0_17] : memref<128x128xbf16, #tpu.memory_space<vmem>>, vector<128x128xbf16>
    %cst_18 = arith.constant dense<0.000000e+00> : vector<8x128xf32>
    %30 = tpu.matmul %28, %29, %cst_18 {dimension_numbers = #tpu.dot_dimension_numbers<[1], [0], [0], [1], [0, 0, 1, 1], [], []>} : vector<8x128xbf16>, vector<128x128xbf16>, vector<8x128xf32> -> vector<8x128xf32>
    %c0_19 = arith.constant 0 : index
    %c0_20 = arith.constant 0 : index
    %31 = vector.load %arg7[%c0_19, %c0_20] : memref<1x128xf32, #tpu.memory_space<vmem>>, vector<1x128xf32>
    %32 = vector.broadcast %31 : vector<1x128xf32> to vector<8x128xf32>
    %33 = arith.addf %30, %32 : vector<8x128xf32>
    %c0_21 = arith.constant 0 : index
    %c0_22 = arith.constant 0 : index
    %34 = vector.load %arg8[%c0_21, %c0_22] : memref<8x128xf32, #tpu.memory_space<vmem>>, vector<8x128xf32>
    tpu.vector_store %arg8[%c0_21, %c0_22], %33 {strides = array<i32>} : memref<8x128xf32, #tpu.memory_space<vmem>>, vector<8x128xf32>,
    return
  }
  func.func @transform_0(%arg0: i32) -> (i32, i32) {
    %c0_i32 = arith.constant 0 : i32
    %c0_i32_0 = arith.constant 0 : i32
    return %arg0, %c0_i32 : i32, i32
  }
  func.func @transform_1(%arg0: i32) -> (i32, i32) {
    %c0_i32 = arith.constant 0 : i32
    %c0_i32_0 = arith.constant 0 : i32
    %c0_i32_1 = arith.constant 0 : i32
    return %c0_i32, %c0_i32_0 : i32, i32
  }
  func.func @transform_2(%arg0: i32) -> (i32, i32) {
    %c0_i32 = arith.constant 0 : i32
    %c0_i32_0 = arith.constant 0 : i32
    %c0_i32_1 = arith.constant 0 : i32
    return %c0_i32, %c0_i32_0 : i32, i32
  }
  func.func @transform_3(%arg0: i32) -> (i32, i32) {
    %c0_i32 = arith.constant 0 : i32
    %c0_i32_0 = arith.constant 0 : i32
    %c0_i32_1 = arith.constant 0 : i32
    return %c0_i32, %c0_i32_0 : i32, i32
  }
  func.func @transform_4(%arg0: i32) -> (i32, i32) {
    %c0_i32 = arith.constant 0 : i32
    %c0_i32_0 = arith.constant 0 : i32
    %c0_i32_1 = arith.constant 0 : i32
    return %c0_i32, %c0_i32_0 : i32, i32
  }
  func.func @transform_5(%arg0: i32) -> (i32, i32) {
    %c0_i32 = arith.constant 0 : i32
    %c0_i32_0 = arith.constant 0 : i32
    %c0_i32_1 = arith.constant 0 : i32
    return %c0_i32, %c0_i32_0 : i32, i32
  }
  func.func @transform_6(%arg0: i32) -> (i32, i32) {
    %c0_i32 = arith.constant 0 : i32
    %c0_i32_0 = arith.constant 0 : i32
    %c0_i32_1 = arith.constant 0 : i32
    return %c0_i32, %c0_i32_0 : i32, i32
  }
  func.func @transform_7(%arg0: i32) -> (i32, i32) {
    %c0_i32 = arith.constant 0 : i32
    %c0_i32_0 = arith.constant 0 : i32
    return %arg0, %c0_i32 : i32, i32
  }
}

</mosaic_0001>

<bundles_post_ra>
// kernel: tpu_custom_call.1
= control target key start
LH: loop header
LB: loop body
LE: loop exit
PB: predicated region body
PF: predicated region fallthrough
CT: control target
= control target key end

     0   :  { %12 = vsyncpa [#allocation3], 0  ;;  %s871_s0 = inlined_call_operand.hbm [shape: bf16[8,128], index: 0, kind: input, shape index: {}]   ;;  %s872_s1 = inlined_call_operand.hbm [shape: bf16[128,128], index: 1, kind: input, shape index: {}]   ;;  %s873_s2 = inlined_call_operand.vmem [shape: f32[1,128], index: 2, kind: input, shape index: {}]   ;;  %s874_s3 = inlined_call_operand.hbm [shape: bf16[128,128], index: 3, kind: input, shape index: {}]   ;;  %s875_s4 = inlined_call_operand.vmem [shape: f32[1,128], index: 4, kind: input, shape index: {}]   ;;  %s876_s5 = inlined_call_operand.hbm [shape: bf16[128,128], index: 5, kind: input, shape index: {}]   ;;  %s877_s6 = inlined_call_operand.vmem [shape: f32[1,128], index: 6, kind: input, shape index: {}]   ;;  %s878_s7 = inlined_call_operand.hbm [shape: f32[8,128], index: 7, kind: output, shape index: {}]  }
   0x1   :  { %13 = vsyncpa [#allocation6], 0 }
   0x2   :  { %14 = vsyncpa [#allocation9], 0 }
   0x3   :  { %15 = vsyncpa [#allocation4], 0  ;;  %s714_s24 = smov [#allocation5]   ;;  %s596_s28 = scalar_lea.hbm %s872_s1, 1024 }
   0x4   :  { %s31_s25 = sshll.u32 %s714_s24, 4  ;;  %p597_p0 = scmp.ne.s32.totalorder %s872_s1, %s596_s28  ;;  %s32_s25 = int_to_ptr.vmem [resolvable:$true] %s31_s25 }
   0x5   :  { %p600_p1 = scmp.lt.u32.totalorder %s596_s28, %s872_s1 }
   0x7   :  { %p602_p2 = pnand %p600_p1, %p597_p0 }
   0x9   :  { %605 = shalt.err (!%p602_p2)
}
   0xa   :  { %s606_s10 = scalar_lea.vmem %s32_s25, 1024  ;;  %p611_p4 = scmp.lt.s32.totalorder %s32_s25, %s32_s25 }
   0xb   :  { %p607_p3 = scmp.ne.s32.totalorder %s32_s25, %s606_s10  ;;  %p612_p5 = scmp.lt.s32.totalorder %s606_s10, %s606_s10 }
   0xd   :  { %p613_p6 = por %p612_p5, %p611_p4 }
   0xf   :  { %p614_p7 = pnand %p613_p6, %p607_p3 }
  0x11   :  { %617 = shalt.err (!%p614_p7)
}
  0x12   :  { %s715_s11 = smov 64   ;;  %s716_s12 = smov 4  }
  0x13   :  { %37 = dma.hbm_to_vmem [thread:$0]  %s872_s1, 1024, %s32_s25, [#allocation6], %s715_s11, %s715_s11, %s716_s12  }
  0x14   :  { %s717_s15 = smov [#allocation2]   ;;  %s718_s17 = smov [#allocation7]  }
  0x15   :  { %s22_s16 = sshll.u32 %s717_s15, 4  ;;  %s45_s18 = sshll.u32 %s718_s17, 4  ;;  %s23_s16 = int_to_ptr.vmem [resolvable:$true] %s22_s16  ;;  %s46_s18 = int_to_ptr.vmem [resolvable:$true] %s45_s18 }
  0x16   :  { %s618_s21 = scalar_lea.hbm %s871_s0, 64 }
  0x17   :  { %p619_p8 = scmp.ne.s32.totalorder %s871_s0, %s618_s21  ;;  %p622_p9 = scmp.lt.u32.totalorder %s618_s21, %s871_s0 }
  0x19   :  { %p624_p10 = pnand %p622_p9, %p619_p8 }
  0x1b   :  { %627 = shalt.err (!%p624_p10)
}
  0x1c   :  { %s628_s1 = scalar_lea.vmem %s23_s16, 64  ;;  %p633_p12 = scmp.lt.s32.totalorder %s23_s16, %s23_s16 }
  0x1d   :  { %p629_p11 = scmp.ne.s32.totalorder %s23_s16, %s628_s1  ;;  %p634_p13 = scmp.lt.s32.totalorder %s628_s1, %s628_s1 }
  0x1f   :  { %p635_p0 = por %p634_p13, %p633_p12 }
  0x21   :  { %p636_p1 = pnand %p635_p0, %p629_p11 }
  0x23   :  { %639 = shalt.err (!%p636_p1)
}
  0x24   :  { %25 = dma.hbm_to_vmem [thread:$0]  %s871_s0, 64, %s23_s16, [#allocation3]  }
  0x25   :  { %s640_s30 = scalar_lea.hbm %s874_s3, 1024 }
  0x26   :  { %p641_p2 = scmp.ne.s32.totalorder %s874_s3, %s640_s30  ;;  %p644_p3 = scmp.lt.u32.totalorder %s640_s30, %s874_s3 }
  0x28   :  { %p646_p4 = pnand %p644_p3, %p641_p2 }
  0x2a   :  { %649 = shalt.err (!%p646_p4)
}
  0x2b   :  { %s650_s14 = scalar_lea.vmem %s46_s18, 1024  ;;  %p655_p6 = scmp.lt.s32.totalorder %s46_s18, %s46_s18 }
  0x2c   :  { %p651_p5 = scmp.ne.s32.totalorder %s46_s18, %s650_s14  ;;  %p656_p7 = scmp.lt.s32.totalorder %s650_s14, %s650_s14 }
  0x2e   :  { %p657_p8 = por %p656_p7, %p655_p6 }
  0x30   :  { %p658_p9 = pnand %p657_p8, %p651_p5 }
  0x32   :  { %661 = shalt.err (!%p658_p9)
}
  0x33   :  { %51 = dma.hbm_to_vmem [thread:$0]  %s874_s3, 1024, %s46_s18, [#allocation6], %s715_s11, %s715_s11, %s716_s12  }
  0x34   :  { %s719_s16 = smov [#allocation8]   ;;  %s662_s21 = scalar_lea.hbm %s876_s5, 1024 }
  0x35   :  { %s59_s17 = sshll.u32 %s719_s16, 4  ;;  %p663_p10 = scmp.ne.s32.totalorder %s876_s5, %s662_s21  ;;  %s60_s17 = int_to_ptr.vmem [resolvable:$true] %s59_s17 }
  0x36   :  { %p666_p11 = scmp.lt.u32.totalorder %s662_s21, %s876_s5 }
  0x38   :  { %p668_p12 = pnand %p666_p11, %p663_p10 }
  0x3a   :  { %671 = shalt.err (!%p668_p12)
}
  0x3b   :  { %s672_s1 = scalar_lea.vmem %s60_s17, 1024  ;;  %p677_p0 = scmp.lt.s32.totalorder %s60_s17, %s60_s17 }
  0x3c   :  { %p673_p13 = scmp.ne.s32.totalorder %s60_s17, %s672_s1  ;;  %p678_p1 = scmp.lt.s32.totalorder %s672_s1, %s672_s1 }
  0x3e   :  { %p679_p2 = por %p678_p1, %p677_p0 }
  0x40   :  { %p680_p3 = pnand %p679_p2, %p673_p13 }
  0x42   :  { %683 = shalt.err (!%p680_p3)
}
  0x43   :  { %65 = dma.hbm_to_vmem [thread:$0]  %s876_s5, 1024, %s60_s17, [#allocation9], %s715_s11, %s715_s11, %s716_s12  }
  0x44   :  { %706 = dma.done.wait [#allocation3], 64  }
  0x45   :  { %707 = vsyncadd [#allocation3], 4294967232 }
  0x46   :  { %708 = dma.done.wait [#allocation6], 2048  }
  0x47   :  { %709 = vsyncadd [#allocation6], 4294965248 }
  0x48   :  { %710 = dma.done.wait [#allocation9], 1024  }
  0x49   :  { %711 = vsyncadd [#allocation9], 4294966272  ;;  %v720_v0 = vmov 0.0   ;;  %vm721_vm0 = vmmov 0   ;;  %v568_v1 = vld [vmem:[#allocation5] sm:$0xff]   ;;  %v569_v2 = vld [vmem:[#allocation5 + $0x8] sm:$0xff]  }
  0x4a   :  { %499 = vmatprep.subr.bf16.mxu0 %v720_v0  ;;  %515 = vmatprep.mubr.msk.bf16.mxu0 %vm721_vm0, %v720_v0  ;;  %v570_v3 = vld [vmem:[#allocation5 + $0x10] sm:$0xff]   ;;  %v576_v4 = vld [vmem:[#allocation7] sm:$0xff]   ;;  %v571_v5 = vld [vmem:[#allocation5 + $0x18] sm:$0xff]   ;;  %s722_s28 = smov [#allocation10]  }
  0x4b   :  { %519 = vmatprep.subr.bf16.mxu1 %v720_v0  ;;  %535 = vmatprep.mubr.msk.bf16.mxu1 %vm721_vm0, %v720_v0  ;;  %v577_v6 = vld [vmem:[#allocation7 + $0x8] sm:$0xff]   ;;  %v572_v7 = vld [vmem:[#allocation5 + $0x20] sm:$0xff]   ;;  %v578_v8 = vld [vmem:[#allocation7 + $0x10] sm:$0xff]   ;;  %s434_s29 = sshll.u32 %s722_s28, 4  ;;  %s435_s29 = int_to_ptr.vmem [resolvable:$true] %s434_s29 }
  0x4c   :  { %500 = vmatpush3.bf16.msra.mxu0 %v568_v1  ;;  %520 = vmatpush3.bf16.msra.mxu1 %v576_v4  ;;  %v573_v9 = vld [vmem:[#allocation5 + $0x28] sm:$0xff]   ;;  %v574_v10 = vld [vmem:[#allocation5 + $0x30] sm:$0xff]   ;;  %v575_v11 = vld [vmem:[#allocation5 + $0x38] sm:$0xff]   ;;  %p689_p5 = scmp.lt.s32.totalorder %s435_s29, %s435_s29 }
  0x4d   :  { %501 = vmatprep.subr.bf16.mxu0 %v720_v0  ;;  %521 = vmatprep.subr.bf16.mxu1 %v720_v0  ;;  %v81_v12 = vld [vmem:[#allocation2] sm:$0xf]  ;;  %v580_v14 = vld [vmem:[#allocation7 + $0x20] sm:$0xff]   ;;  %v581_v15 = vld [vmem:[#allocation7 + $0x28] sm:$0xff]  }
  0x4e   :  { %v579_v13 = vld [vmem:[#allocation7 + $0x18] sm:$0xff]   ;;  %v582_v16 = vld [vmem:[#allocation7 + $0x30] sm:$0xff]   ;;  %v584_v18 = vld [vmem:[#allocation8] sm:$0xff]  }
  0x4f   :  { %v583_v17 = vld [vmem:[#allocation7 + $0x38] sm:$0xff]   ;;  %v585_v19 = vld [vmem:[#allocation8 + $0x8] sm:$0xff]   ;;  %v586_v20 = vld [vmem:[#allocation8 + $0x10] sm:$0xff]  }
  0x50   :  { %502 = vmatpush3.bf16.msra.mxu0 %v569_v2  ;;  %522 = vmatpush3.bf16.msra.mxu1 %v577_v6  ;;  %v445_v21 = vld [vmem:[%s873_s2] ss:$0 sm:$0xff]  ;;  %v588_v34 = vld [vmem:[#allocation8 + $0x20] sm:$0xff]   ;;  %v589_v35 = vld [vmem:[#allocation8 + $0x28] sm:$0xff]  }
  0x51   :  { %503 = vmatprep.subr.bf16.mxu0 %v720_v0  ;;  %523 = vmatprep.subr.bf16.mxu1 %v720_v0  ;;  %v587_v33 = vld [vmem:[#allocation8 + $0x18] sm:$0xff]   ;;  %v590_v36 = vld [vmem:[#allocation8 + $0x30] sm:$0xff]  }
  0x52   :  { %v591_v37 = vld [vmem:[#allocation8 + $0x38] sm:$0xff]  }
  0x53   :  { %v454_v38 = vld [vmem:[%s875_s4] ss:$0 sm:$0xff]  ;;  %s684_s4 = scalar_lea.vmem %s435_s29, 128 }
  0x54   :  { %504 = vmatpush3.bf16.msra.mxu0 %v570_v3  ;;  %524 = vmatpush3.bf16.msra.mxu1 %v578_v8  ;;  %v463_v50 = vld [vmem:[%s877_s6] ss:$0 sm:$0xff]  ;;  %p685_p4 = scmp.ne.s32.totalorder %s435_s29, %s684_s4  ;;  %p690_p6 = scmp.lt.s32.totalorder %s684_s4, %s684_s4 }
  0x55   :  { %505 = vmatprep.subr.bf16.mxu0 %v720_v0  ;;  %525 = vmatprep.subr.bf16.mxu1 %v720_v0 }
  0x56   :  { %p691_p7 = por %p690_p6, %p689_p5 }
  0x58   :  { %506 = vmatpush3.bf16.msra.mxu0 %v571_v5  ;;  %526 = vmatpush3.bf16.msra.mxu1 %v579_v13  ;;  %p692_p8 = pnand %p691_p7, %p685_p4 }
  0x59   :  { %507 = vmatprep.subr.bf16.mxu0 %v720_v0  ;;  %527 = vmatprep.subr.bf16.mxu1 %v720_v0 }
  0x5c   :  { %508 = vmatpush3.bf16.msra.mxu0 %v572_v7  ;;  %528 = vmatpush3.bf16.msra.mxu1 %v580_v14 }
  0x5d   :  { %509 = vmatprep.subr.bf16.mxu0 %v720_v0  ;;  %529 = vmatprep.subr.bf16.mxu1 %v720_v0 }
  0x60   :  { %510 = vmatpush3.bf16.msra.mxu0 %v573_v9  ;;  %530 = vmatpush3.bf16.msra.mxu1 %v581_v15 }
  0x61   :  { %511 = vmatprep.subr.bf16.mxu0 %v720_v0  ;;  %531 = vmatprep.subr.bf16.mxu1 %v720_v0 }
  0x64   :  { %512 = vmatpush3.bf16.msra.mxu0 %v574_v10  ;;  %532 = vmatpush3.bf16.msra.mxu1 %v582_v16 }
  0x65   :  { %513 = vmatprep.subr.bf16.mxu0 %v720_v0  ;;  %533 = vmatprep.subr.bf16.mxu1 %v720_v0 }
  0x68   :  { %514 = vmatpush3.bf16.msra.mxu0 %v575_v11  ;;  %534 = vmatpush3.bf16.msra.mxu1 %v583_v17 }
  0x69   :  { %539 = vmatprep.subr.bf16.mxu0 %v720_v0 }
  0x6b   :  { %516 = vmatmul.mubr.bf16.vlgmr.msra.gmra.mrb[0].mxu0 %v81_v12 }
  0x6c   :  { %555 = vmatprep.mubr.msk.bf16.mxu0 %vm721_vm0, %v720_v0  ;;  %540 = vmatpush3.bf16.msra.mxu0 %v584_v18 }
  0x6d   :  { %541 = vmatprep.subr.bf16.mxu0 %v720_v0 }
  0x70   :  { %542 = vmatpush3.bf16.msra.mxu0 %v585_v19 }
  0x71   :  { %543 = vmatprep.subr.bf16.mxu0 %v720_v0 }
  0x74   :  { %544 = vmatpush3.bf16.msra.mxu0 %v586_v20 }
  0x75   :  { %545 = vmatprep.subr.bf16.mxu0 %v720_v0 }
  0x78   :  { %546 = vmatpush3.bf16.msra.mxu0 %v587_v33 }
  0x79   :  { %547 = vmatprep.subr.bf16.mxu0 %v720_v0 }
  0x7c   :  { %548 = vmatpush3.bf16.msra.mxu0 %v588_v34 }
  0x7d   :  { %549 = vmatprep.subr.bf16.mxu0 %v720_v0 }
  0x80   :  { %550 = vmatpush3.bf16.msra.mxu0 %v589_v35 }
  0x81   :  { %551 = vmatprep.subr.bf16.mxu0 %v720_v0 }
  0x84   :  { %552 = vmatpush3.bf16.msra.mxu0 %v590_v36 }
  0x85   :  { %553 = vmatprep.subr.bf16.mxu0 %v720_v0 }
  0x88   :  { %554 = vmatpush3.bf16.msra.mxu0 %v591_v37 }
 0x13e   :  { %v187_v22 = vpop.f32.mrb[0].mxu0 }
 0x13f   :  { %v188_v23 = vadd.f32 %v445_v21, %v187_v22  ;;  %v517_v24 = vpop.f32.mrb[1].mxu0 }
 0x140   :  { %v190_v25 = vpop.f32.mrb[2].mxu0 }
 0x141   :  { %v194_v26 = vmul.f32 0.70710677, %v188_v23  ;;  %v518_v27 = vpop.f32.mrb[3].mxu0  ;;  %v193_v29 = vmul.f32 0.5, %v188_v23 }
 0x143   :  { %592 = verf.f32 %v194_v26 }
 0x14d   :  { %v593_v28 = vpop.eup %592 }
 0x14e   :  { %v196_v30 = vadd.f32 1.0, %v593_v28 }
 0x150   :  { %v197_v31 = vmul.f32 %v196_v30, %v193_v29 }
 0x152   :  { %v198_v32 = vpack.c.bf16 %v197_v31, %v197_v31 }
 0x154   :  { %536 = vmatmul.mubr.bf16.vlgmr.msra.gmra.mrb[0].mxu1 %v198_v32 }
 0x227   :  { %v304_v39 = vpop.f32.mrb[0].mxu1 }
 0x228   :  { %v305_v40 = vadd.f32 %v454_v38, %v304_v39  ;;  %v537_v41 = vpop.f32.mrb[1].mxu1 }
 0x229   :  { %v307_v42 = vpop.f32.mrb[2].mxu1 }
 0x22a   :  { %v311_v43 = vmul.f32 0.70710677, %v305_v40  ;;  %v538_v44 = vpop.f32.mrb[3].mxu1  ;;  %v310_v46 = vmul.f32 0.5, %v305_v40 }
 0x22c   :  { %594 = verf.f32 %v311_v43 }
 0x236   :  { %v595_v45 = vpop.eup %594 }
 0x237   :  { %v313_v47 = vadd.f32 1.0, %v595_v45 }
 0x239   :  { %v314_v48 = vmul.f32 %v313_v47, %v310_v46 }
 0x23b   :  { %v315_v49 = vpack.c.bf16 %v314_v48, %v314_v48 }
 0x23d   :  { %556 = vmatmul.mubr.bf16.vlgmr.msra.gmra.mrb[4].mxu0 %v315_v49 }
 0x310   :  { %v421_v51 = vpop.f32.mrb[4].mxu0 }
 0x311   :  { %v422_v52 = vadd.f32 %v463_v50, %v421_v51  ;;  %v557_v53 = vpop.f32.mrb[5].mxu0 }
 0x312   :  { %v424_v54 = vpop.f32.mrb[6].mxu0 }
 0x313   :  { %427 = vst [vmem:[#allocation10] sm:$0xff] %v422_v52  ;;  %v558_v55 = vpop.f32.mrb[7].mxu0 }
 0x314   :  { %695 = shalt.err (!%p692_p8)
}
 0x315   :  { %s696_s6 = scalar_lea.hbm %s878_s7, 128 }
 0x316   :  { %p697_p9 = scmp.ne.s32.totalorder %s878_s7, %s696_s6  ;;  %p700_p10 = scmp.lt.u32.totalorder %s696_s6, %s878_s7 }
 0x318   :  { %p702_p11 = pnand %p700_p10, %p697_p9 }
 0x31a   :  { %705 = shalt.err (!%p702_p11)
}
 0x31b   :  { %437 = dma.vmem_to_hbm [thread:$0]  %s435_s29, 128, %s878_s7, [#allocation4]  }
 0x31c   :  { %712 = dma.done.wait [#allocation4], 128  }
 0x31d   :  { %713 = vsyncadd [#allocation4], 4294967168 }
 0x31e   :  { %441 = vsyncpa [#allocation3], 1 }
 0x31f   :  { %442 = vsyncpa [#allocation6], 1 }
 0x320   :  { %443 = vsyncpa [#allocation9], 1 }
 0x321   :  { %444 = vsyncpa [#allocation4], 1 }

</bundles_post_ra>
